<compile_context>
chip_gen: v5e
topology: v5e:2x2
jax: 0.10.0
libtpu: 0.0.40
codegen_flags: <defaults>
</compile_context>

<pallas_src>
import functools

import jax
import jax.numpy as jnp
from jax import lax
from jax.experimental import pallas as pl
from jax.experimental.pallas import tpu as pltpu

LANE = 128
_VMEM_BUDGET = 24 * 1024 * 1024   # tile-selection working-set budget (bytes)
_VMEM_LIMIT = 32 * 1024 * 1024    # scoped VMEM limit handed to Mosaic


def _round_up(x, m):
    return (x + m - 1) // m * m


def _pick_tile_n(cout_p, cin_p, tm, out_itemsize):
    """Largest lane tile dividing Cout_p whose double-buffered blocks fit VMEM."""
    for tn in (512, 384, 256, 128):
        if cout_p % tn:
            continue
        need = 2 * (tm * cin_p * 2          # x block  (bf16), double-buffered
                    + cin_p * tn * 2        # w block  (bf16)
                    + tm * tn * out_itemsize)  # out block
        if need <= _VMEM_BUDGET:
            return tn
    return 128


def _mlp_layer_kernel(*refs, active_func, eps, n_rows, rows_padded, has_mask):
    """One grid step of a tiled MLP layer.

    Grid = (cout_tiles, 2, m_tiles).  The middle "pass" axis:
      pass 0: accumulate per-channel sum / sum-of-squares of y
      pass 1: recompute y, apply folded BN affine + activation, store.
    """
    if has_mask:
        (x_ref, w_ref, b_ref, mask_ref, gamma_ref, beta_ref,
         o_ref, sum_ref, sq_ref, scale_ref, shift_ref) = refs
    else:
        (x_ref, w_ref, gamma_ref, beta_ref,
         o_ref, sum_ref, sq_ref, scale_ref, shift_ref) = refs

    p = pl.program_id(1)
    i = pl.program_id(2)
    n_i = pl.num_programs(2)

    # Linear: bf16 operands on the MXU, f32 accumulation.
    y = jnp.dot(x_ref[...], w_ref[...], preferred_element_type=jnp.float32)
    if has_mask:
        # PyTorch order: (x @ W + b) * mask.
        y = (y + b_ref[...]) * mask_ref[...]
    # else: bias skipped -- a per-channel constant shift is exactly cancelled
    # by the BatchNorm mean subtraction (valid only for the no-mask path).

    @pl.when(jnp.logical_and(p == 0, i == 0))
    def _init():
        sum_ref[...] = jnp.zeros_like(sum_ref)
        sq_ref[...] = jnp.zeros_like(sq_ref)

    @pl.when(p == 0)
    def _accumulate():
        yv = y
        if rows_padded:
            tm = y.shape[0]
            row = i * tm + lax.broadcasted_iota(jnp.int32, (tm, 1), 0)
            yv = jnp.where(row < n_rows, y, 0.0)
        sum_ref[...] += jnp.sum(yv, axis=0, keepdims=True)
        sq_ref[...] += jnp.sum(yv * yv, axis=0, keepdims=True)

    @pl.when(jnp.logical_and(p == 0, i == n_i - 1))
    def _finalize_stats():
        m = jnp.float32(n_rows)
        mean = sum_ref[...] / m
        # One-pass biased variance, f32 accumulators (clamped for safety).
        var = jnp.maximum(sq_ref[...] / m - mean * mean, 0.0)
        inv = lax.rsqrt(var + eps)
        scale = gamma_ref[...] * inv
        scale_ref[...] = scale
        shift_ref[...] = beta_ref[...] - mean * scale

    @pl.when(p == 1)
    def _normalize_store():
        yh = y * scale_ref[...] + shift_ref[...]
        if active_func == 'relu':
            out = jnp.maximum(yh, 0.0)
        elif active_func == 'sigmoid':
            out = jax.nn.sigmoid(yh)
        else:  # tanh
            out = jnp.tanh(yh)
        o_ref[...] = out.astype(o_ref.dtype)


def _run_layer(x2d, w, b, gamma, beta, mask2d, active_func, out_dtype,
               *, n_rows, tm, eps=1e-5):
    """x2d: (Mp, Cin_p) bf16; w: (Cin_p, Cout_p) bf16; returns (Mp, Cout_p)."""
    Mp, Cin_p = x2d.shape
    Cout_p = w.shape[1]

    TM = min(tm, Mp)
    assert Mp % TM == 0 and TM % 8 == 0
    out_itemsize = jnp.dtype(out_dtype).itemsize
    TN = _pick_tile_n(Cout_p, Cin_p, TM, out_itemsize)
    n_j, n_i = Cout_p // TN, Mp // TM
    has_mask = mask2d is not None
    rows_padded = (Mp != n_rows)

    kernel = functools.partial(
        _mlp_layer_kernel, active_func=active_func, eps=eps,
        n_rows=n_rows, rows_padded=rows_padded, has_mask=has_mask)

    x_spec = pl.BlockSpec((TM, Cin_p), lambda j, p, i: (i, 0))
    w_spec = pl.BlockSpec((Cin_p, TN), lambda j, p, i: (0, j))
    chan_spec = pl.BlockSpec((1, TN), lambda j, p, i: (0, j))

    in_specs = [x_spec, w_spec]
    args = [x2d, w]
    if has_mask:
        in_specs += [chan_spec, pl.BlockSpec((TM, 1), lambda j, p, i: (i, 0))]
        args += [b, mask2d]
    in_specs += [chan_spec, chan_spec]
    args += [gamma, beta]

    # Pass 0 never writes the output; pinning its block index to (0, j) during
    # pass 0 keeps that buffer resident (no garbage HBM writeback).
    out_spec = pl.BlockSpec((TM, TN), lambda j, p, i: (i * p, j))

    cost = pl.CostEstimate(
        flops=2 * (2 * Mp * Cin_p * Cout_p) + 8 * Mp * Cout_p,
        transcendentals=(Mp * Cout_p if active_func in ('sigmoid', 'tanh')
                         else 0) + Cout_p,
        bytes_accessed=(2 * Mp * Cin_p * x2d.dtype.itemsize
                        + Cin_p * Cout_p * w.dtype.itemsize
                        + Mp * Cout_p * out_itemsize))

    return pl.pallas_call(
        kernel,
        out_shape=jax.ShapeDtypeStruct((Mp, Cout_p), out_dtype),
        grid=(n_j, 2, n_i),
        in_specs=in_specs,
        out_specs=out_spec,
        scratch_shapes=[pltpu.VMEM((1, TN), jnp.float32)] * 4,
        compiler_params=pltpu.CompilerParams(
            dimension_semantics=("parallel", "arbitrary", "arbitrary"),
            vmem_limit_bytes=_VMEM_LIMIT),
        cost_estimate=cost,
    )(*args)


def _mlp_forward(params, x, mask, *, active_func, in_channel, out_channel):
    """Jitted forward over the channel-padded, kernel-ready parameters."""
    B, N, Cin = x.shape
    assert Cin == in_channel
    M = B * N
    TM = min(512, _round_up(M, 8))
    Mp = _round_up(M, TM)
    Cin_p = _round_up(Cin, LANE)

    h = jnp.zeros((Mp, Cin_p), jnp.bfloat16)
    h = h.at[:M, :Cin].set(x.reshape(M, Cin).astype(jnp.bfloat16))

    mask2d = None
    if mask is not None:
        # TODO(synk): per-channel masks (B, N, C) are not supported; only
        # channel-broadcast masks (the common usage of this module).
        m = jnp.broadcast_to(
            mask.astype(jnp.float32).reshape(B, N, -1)[..., :1], (B, N, 1)
        ).reshape(M, 1)
        mask2d = jnp.zeros((Mp, 1), jnp.float32).at[:M, :].set(m)

    n_layers = len(params)
    for li, (w, b, gamma, beta) in enumerate(params):
        out_dtype = jnp.float32 if li == n_layers - 1 else jnp.bfloat16
        h = _run_layer(h, w, b, gamma, beta, mask2d, active_func, out_dtype,
                       n_rows=M, tm=TM)
    return h[:M, :out_channel].reshape(B, N, out_channel)


class PallasMLP:
    """JAX/Pallas equivalent of models/MMFM.py::MLP (forward only)."""

    def __init__(self, in_channel, mlp_list, active_func='relu', key=None):
        if active_func not in ('relu', 'sigmoid', 'tanh'):
            raise ValueError('Invalid activation function')
        self.active_func = active_func
        self.in_channel = in_channel
        self.mlp_list = list(mlp_list)
        self.params = []   # kernel-ready, channel-padded parameters
        key = key if key is not None else jax.random.PRNGKey(0)
        last = in_channel
        for out_ch in mlp_list:
            key, kw, kb = jax.random.split(key, 3)
            bound = 1.0 / (last ** 0.5)
            # Linear stored as (Cin, Cout) so the kernel does x @ W directly.
            w = jax.random.uniform(kw, (last, out_ch), jnp.float32, -bound, bound)
            b = jax.random.uniform(kb, (1, out_ch), jnp.float32, -bound, bound)
            gamma = jnp.ones((1, out_ch), jnp.float32)    # BN weight init
            beta = jnp.zeros((1, out_ch), jnp.float32)    # BN bias init
            cin_p = _round_up(last, LANE)
            cout_p = _round_up(out_ch, LANE)
            w_p = jnp.zeros((cin_p, cout_p), jnp.float32).at[:last, :out_ch].set(w)
            b_p = jnp.zeros((1, cout_p), jnp.float32).at[:, :out_ch].set(b)
            g_p = jnp.zeros((1, cout_p), jnp.float32).at[:, :out_ch].set(gamma)
            be_p = jnp.zeros((1, cout_p), jnp.float32).at[:, :out_ch].set(beta)
            self.params.append((w_p.astype(jnp.bfloat16), b_p, g_p, be_p))
            last = out_ch
        self._forward = jax.jit(functools.partial(
            _mlp_forward, active_func=self.active_func,
            in_channel=self.in_channel, out_channel=self.mlp_list[-1]))

    def __call__(self, x, mask=None):
        # x: (B, N, Cin).  mask (if given): broadcastable to (B, N, 1).
        return self._forward(self.params, x, mask)


def _reference_mlp(model, x, mask=None):
    """Pure-JAX reference with PyTorch semantics (f32 math, bf16-cast inputs)."""
    B, N, Cin = x.shape
    M = B * N
    h = x.reshape(M, Cin).astype(jnp.bfloat16).astype(jnp.float32)
    last = Cin
    for (w_p, b_p, g_p, be_p), out_ch in zip(model.params, model.mlp_list):
        w = w_p[:last, :out_ch].astype(jnp.float32)
        y = h @ w + b_p[:, :out_ch]
        if mask is not None:
            y = y * mask.astype(jnp.float32).reshape(M, -1)[:, :1]
        mean = jnp.mean(y, axis=0, keepdims=True)
        var = jnp.mean((y - mean) ** 2, axis=0, keepdims=True)   # biased
        yh = (y - mean) * lax.rsqrt(var + 1e-5)
        yh = yh * g_p[:, :out_ch] + be_p[:, :out_ch]
        if model.active_func == 'relu':
            h = jnp.maximum(yh, 0.0)
        elif model.active_func == 'sigmoid':
            h = jax.nn.sigmoid(yh)
        else:
            h = jnp.tanh(yh)
        last = out_ch
    return h.reshape(B, N, -1)


if __name__ == "__main__":
    key = jax.random.PRNGKey(0)
    kx, km, kp = jax.random.split(key, 3)

    B, N, Cin = 2, 8, 16
    mlp_list = [32, 64]

    x = jax.random.normal(kx, (B, N, Cin), jnp.float32)
    mask = (jax.random.uniform(km, (B, N, 1)) > 0.3).astype(jnp.float32)

    model = PallasMLP(Cin, mlp_list, active_func='relu', key=kp)

    out = jax.block_until_ready(model(x))                # mask=None path
    out_m = jax.block_until_ready(model(x, mask=mask))   # masked path

    assert out.shape == (B, N, mlp_list[-1])
    assert out_m.shape == (B, N, mlp_list[-1])
    assert bool(jnp.all(jnp.isfinite(out))) and bool(jnp.all(jnp.isfinite(out_m)))
    assert jnp.allclose(out, _reference_mlp(model, x), rtol=5e-2, atol=5e-2)
    assert jnp.allclose(out_m, _reference_mlp(model, x, mask=mask),
                        rtol=5e-2, atol=5e-2)

    # Exercise the row-padded (M not a multiple of the tile) path.
    x2 = jax.random.normal(kx, (2, 7, Cin), jnp.float32)
    out2 = jax.block_until_ready(model(x2))
    assert jnp.allclose(out2, _reference_mlp(model, x2), rtol=5e-2, atol=5e-2)

    # Exercise a transcendental activation (EUP path).
    model_t = PallasMLP(Cin, mlp_list, active_func='tanh', key=kp)
    out_t = jax.block_until_ready(model_t(x))
    assert jnp.allclose(out_t, _reference_mlp(model_t, x), rtol=5e-2, atol=5e-2)

    print("KERNEL_OK")
</pallas_src>

<mosaic_0001>
module attributes {stable_mosaic.version = 11 : i64} {
  func.func @_mlp_layer_kernel(%arg0: i32, %arg1: i32, %arg2: i32, %arg3: memref<16x128xbf16, #tpu.memory_space<vmem>>, %arg4: memref<128x128xbf16, #tpu.memory_space<vmem>>, %arg5: memref<1x128xf32, #tpu.memory_space<vmem>>, %arg6: memref<1x128xf32, #tpu.memory_space<vmem>>, %arg7: memref<16x128xbf16, #tpu.memory_space<vmem>>, %arg8: memref<1x128xf32, #tpu.memory_space<vmem>>, %arg9: memref<1x128xf32, #tpu.memory_space<vmem>>, %arg10: memref<1x128xf32, #tpu.memory_space<vmem>>, %arg11: memref<1x128xf32, #tpu.memory_space<vmem>>) attributes {dimension_semantics = [#tpu.dimension_semantics<parallel>, #tpu.dimension_semantics<arbitrary>, #tpu.dimension_semantics<arbitrary>], iteration_bounds = array<i64: 1, 2, 1>, scalar_prefetch = 0 : i64, scratch_operands = 4 : i64, tpu.core_type = #tpu.core_type<tc>, window_params = [{transform_indices = @transform_0, window_bounds = array<i64: 16, 128>}, {transform_indices = @transform_1, window_bounds = array<i64: 128, 128>}, {transform_indices = @transform_2, window_bounds = array<i64: 1, 128>}, {transform_indices = @transform_3, window_bounds = array<i64: 1, 128>}, {transform_indices = @transform_4, window_bounds = array<i64: 16, 128>}]} {
    %c0 = arith.constant 0 : index
    %c0_0 = arith.constant 0 : index
    %0 = vector.load %arg3[%c0, %c0_0] : memref<16x128xbf16, #tpu.memory_space<vmem>>, vector<16x128xbf16>
    %c0_1 = arith.constant 0 : index
    %c0_2 = arith.constant 0 : index
    %1 = vector.load %arg4[%c0_1, %c0_2] : memref<128x128xbf16, #tpu.memory_space<vmem>>, vector<128x128xbf16>
    %cst = arith.constant dense<0.000000e+00> : vector<16x128xf32>
    %2 = tpu.matmul %0, %1, %cst {dimension_numbers = #tpu.dot_dimension_numbers<[1], [0], [0], [1], [0, 0, 1, 1], [], []>} : vector<16x128xbf16>, vector<128x128xbf16>, vector<16x128xf32> -> vector<16x128xf32>
    %c0_i32 = arith.constant 0 : i32
    %3 = arith.cmpi eq, %arg1, %c0_i32 : i32
    %c0_i32_3 = arith.constant 0 : i32
    %4 = arith.cmpi eq, %arg2, %c0_i32_3 : i32
    %5 = arith.andi %3, %4 : i1
    %6 = arith.extui %5 : i1 to i32
    %c0_i32_4 = arith.constant 0 : i32
    %7 = arith.cmpi ne, %6, %c0_i32_4 : i32
    scf.if %7 {
      %cst_11 = arith.constant 0.000000e+00 : f32
      %19 = vector.broadcast %cst_11 : f32 to vector<1x128xf32>
      %c0_12 = arith.constant 0 : index
      %c0_13 = arith.constant 0 : index
      %20 = vector.load %arg8[%c0_12, %c0_13] : memref<1x128xf32, #tpu.memory_space<vmem>>, vector<1x128xf32>
      tpu.vector_store %arg8[%c0_12, %c0_13], %19 {strides = array<i32>} : memref<1x128xf32, #tpu.memory_space<vmem>>, vector<1x128xf32>,
      %cst_14 = arith.constant 0.000000e+00 : f32
      %21 = vector.broadcast %cst_14 : f32 to vector<1x128xf32>
      %c0_15 = arith.constant 0 : index
      %c0_16 = arith.constant 0 : index
      %22 = vector.load %arg9[%c0_15, %c0_16] : memref<1x128xf32, #tpu.memory_space<vmem>>, vector<1x128xf32>
      tpu.vector_store %arg9[%c0_15, %c0_16], %21 {strides = array<i32>} : memref<1x128xf32, #tpu.memory_space<vmem>>, vector<1x128xf32>,
    } else {
    }
    %c0_i32_5 = arith.constant 0 : i32
    %8 = arith.cmpi eq, %arg1, %c0_i32_5 : i32
    %9 = arith.extui %8 : i1 to i32
    %c0_i32_6 = arith.constant 0 : i32
    %10 = arith.cmpi ne, %9, %c0_i32_6 : i32
    scf.if %10 {
      %c0_11 = arith.constant 0 : index
      %c0_12 = arith.constant 0 : index
      %19 = vector.load %arg8[%c0_11, %c0_12] : memref<1x128xf32, #tpu.memory_space<vmem>>, vector<1x128xf32>
      %cst_13 = arith.constant dense<0.000000e+00> : vector<128xf32>
      %20 = vector.multi_reduction <add>, %2, %cst_13 [0] : vector<16x128xf32> to vector<128xf32>
      %21 = vector.shape_cast %20 : vector<128xf32> to vector<1x128xf32>
      %22 = arith.addf %19, %21 : vector<1x128xf32>
      %c0_14 = arith.constant 0 : index
      %c0_15 = arith.constant 0 : index
      %23 = vector.load %arg8[%c0_14, %c0_15] : memref<1x128xf32, #tpu.memory_space<vmem>>, vector<1x128xf32>
      tpu.vector_store %arg8[%c0_14, %c0_15], %22 {strides = array<i32>} : memref<1x128xf32, #tpu.memory_space<vmem>>, vector<1x128xf32>,
      %c0_16 = arith.constant 0 : index
      %c0_17 = arith.constant 0 : index
      %24 = vector.load %arg9[%c0_16, %c0_17] : memref<1x128xf32, #tpu.memory_space<vmem>>, vector<1x128xf32>
      %25 = arith.mulf %2, %2 : vector<16x128xf32>
      %cst_18 = arith.constant dense<0.000000e+00> : vector<128xf32>
      %26 = vector.multi_reduction <add>, %25, %cst_18 [0] : vector<16x128xf32> to vector<128xf32>
      %27 = vector.shape_cast %26 : vector<128xf32> to vector<1x128xf32>
      %28 = arith.addf %24, %27 : vector<1x128xf32>
      %c0_19 = arith.constant 0 : index
      %c0_20 = arith.constant 0 : index
      %29 = vector.load %arg9[%c0_19, %c0_20] : memref<1x128xf32, #tpu.memory_space<vmem>>, vector<1x128xf32>
      tpu.vector_store %arg9[%c0_19, %c0_20], %28 {strides = array<i32>} : memref<1x128xf32, #tpu.memory_space<vmem>>, vector<1x128xf32>,
    } else {
    }
    %c0_i32_7 = arith.constant 0 : i32
    %11 = arith.cmpi eq, %arg1, %c0_i32_7 : i32
    %c0_i32_8 = arith.constant 0 : i32
    %12 = arith.cmpi eq, %arg2, %c0_i32_8 : i32
    %13 = arith.andi %11, %12 : i1
    %14 = arith.extui %13 : i1 to i32
    %c0_i32_9 = arith.constant 0 : i32
    %15 = arith.cmpi ne, %14, %c0_i32_9 : i32
    scf.if %15 {
      %c0_11 = arith.constant 0 : index
      %c0_12 = arith.constant 0 : index
      %19 = vector.load %arg8[%c0_11, %c0_12] : memref<1x128xf32, #tpu.memory_space<vmem>>, vector<1x128xf32>
      %cst_13 = arith.constant 1.600000e+01 : f32
      %20 = vector.broadcast %cst_13 : f32 to vector<1x128xf32>
      %21 = arith.divf %19, %20 : vector<1x128xf32>
      %c0_14 = arith.constant 0 : index
      %c0_15 = arith.constant 0 : index
      %22 = vector.load %arg9[%c0_14, %c0_15] : memref<1x128xf32, #tpu.memory_space<vmem>>, vector<1x128xf32>
      %cst_16 = arith.constant 1.600000e+01 : f32
      %23 = vector.broadcast %cst_16 : f32 to vector<1x128xf32>
      %24 = arith.divf %22, %23 : vector<1x128xf32>
      %25 = arith.mulf %21, %21 : vector<1x128xf32>
      %26 = arith.subf %24, %25 : vector<1x128xf32>
      %cst_17 = arith.constant 0.000000e+00 : f32
      %27 = vector.broadcast %cst_17 : f32 to vector<1x128xf32>
      %28 = arith.maximumf %26, %27 : vector<1x128xf32>
      %cst_18 = arith.constant 9.99999974E-6 : f32
      %29 = vector.broadcast %cst_18 : f32 to vector<1x128xf32>
      %30 = arith.addf %28, %29 : vector<1x128xf32>
      %31 = math.rsqrt %30 : vector<1x128xf32>
      %c0_19 = arith.constant 0 : index
      %c0_20 = arith.constant 0 : index
      %32 = vector.load %arg5[%c0_19, %c0_20] : memref<1x128xf32, #tpu.memory_space<vmem>>, vector<1x128xf32>
      %33 = arith.mulf %32, %31 : vector<1x128xf32>
      %c0_21 = arith.constant 0 : index
      %c0_22 = arith.constant 0 : index
      %34 = vector.load %arg10[%c0_21, %c0_22] : memref<1x128xf32, #tpu.memory_space<vmem>>, vector<1x128xf32>
      tpu.vector_store %arg10[%c0_21, %c0_22], %33 {strides = array<i32>} : memref<1x128xf32, #tpu.memory_space<vmem>>, vector<1x128xf32>,
      %c0_23 = arith.constant 0 : index
      %c0_24 = arith.constant 0 : index
      %35 = vector.load %arg6[%c0_23, %c0_24] : memref<1x128xf32, #tpu.memory_space<vmem>>, vector<1x128xf32>
      %36 = arith.mulf %21, %33 : vector<1x128xf32>
      %37 = arith.subf %35, %36 : vector<1x128xf32>
      %c0_25 = arith.constant 0 : index
      %c0_26 = arith.constant 0 : index
      %38 = vector.load %arg11[%c0_25, %c0_26] : memref<1x128xf32, #tpu.memory_space<vmem>>, vector<1x128xf32>
      tpu.vector_store %arg11[%c0_25, %c0_26], %37 {strides = array<i32>} : memref<1x128xf32, #tpu.memory_space<vmem>>, vector<1x128xf32>,
    } else {
    }
    %c1_i32 = arith.constant 1 : i32
    %16 = arith.cmpi eq, %arg1, %c1_i32 : i32
    %17 = arith.extui %16 : i1 to i32
    %c0_i32_10 = arith.constant 0 : i32
    %18 = arith.cmpi ne, %17, %c0_i32_10 : i32
    scf.if %18 {
      %c0_11 = arith.constant 0 : index
      %c0_12 = arith.constant 0 : index
      %19 = vector.load %arg10[%c0_11, %c0_12] : memref<1x128xf32, #tpu.memory_space<vmem>>, vector<1x128xf32>
      %20 = vector.broadcast %19 : vector<1x128xf32> to vector<16x128xf32>
      %21 = arith.mulf %2, %20 : vector<16x128xf32>
      %c0_13 = arith.constant 0 : index
      %c0_14 = arith.constant 0 : index
      %22 = vector.load %arg11[%c0_13, %c0_14] : memref<1x128xf32, #tpu.memory_space<vmem>>, vector<1x128xf32>
      %23 = vector.broadcast %22 : vector<1x128xf32> to vector<16x128xf32>
      %24 = arith.addf %21, %23 : vector<16x128xf32>
      %cst_15 = arith.constant 0.000000e+00 : f32
      %25 = vector.broadcast %cst_15 : f32 to vector<16x128xf32>
      %26 = arith.maximumf %24, %25 : vector<16x128xf32>
      %27 = arith.truncf %26 : vector<16x128xf32> to vector<16x128xbf16>
      %c0_16 = arith.constant 0 : index
      %c0_17 = arith.constant 0 : index
      %28 = vector.load %arg7[%c0_16, %c0_17] : memref<16x128xbf16, #tpu.memory_space<vmem>>, vector<16x128xbf16>
      tpu.vector_store %arg7[%c0_16, %c0_17], %27 {strides = array<i32>} : memref<16x128xbf16, #tpu.memory_space<vmem>>, vector<16x128xbf16>,
    } else {
    }
    return
  }
  func.func @transform_0(%arg0: i32, %arg1: i32, %arg2: i32) -> (i32, i32) {
    %c0_i32 = arith.constant 0 : i32
    %c0_i32_0 = arith.constant 0 : i32
    return %arg2, %c0_i32 : i32, i32
  }
  func.func @transform_1(%arg0: i32, %arg1: i32, %arg2: i32) -> (i32, i32) {
    %c0_i32 = arith.constant 0 : i32
    %c0_i32_0 = arith.constant 0 : i32
    return %c0_i32, %arg0 : i32, i32
  }
  func.func @transform_2(%arg0: i32, %arg1: i32, %arg2: i32) -> (i32, i32) {
    %c0_i32 = arith.constant 0 : i32
    %c0_i32_0 = arith.constant 0 : i32
    return %c0_i32, %arg0 : i32, i32
  }
  func.func @transform_3(%arg0: i32, %arg1: i32, %arg2: i32) -> (i32, i32) {
    %c0_i32 = arith.constant 0 : i32
    %c0_i32_0 = arith.constant 0 : i32
    return %c0_i32, %arg0 : i32, i32
  }
  func.func @transform_4(%arg0: i32, %arg1: i32, %arg2: i32) -> (i32, i32) {
    %0 = arith.muli %arg2, %arg1 : i32
    %c0_i32 = arith.constant 0 : i32
    return %0, %arg0 : i32, i32
  }
}

module attributes {stable_mosaic.version = 11 : i64} {
  func.func @_mlp_layer_kernel(%arg0: i32, %arg1: i32, %arg2: i32, %arg3: memref<16x128xbf16, #tpu.memory_space<vmem>>, %arg4: memref<128x128xbf16, #tpu.memory_space<vmem>>, %arg5: memref<1x128xf32, #tpu.memory_space<vmem>>, %arg6: memref<1x128xf32, #tpu.memory_space<vmem>>, %arg7: memref<16x128xf32, #tpu.memory_space<vmem>>, %arg8: memref<1x128xf32, #tpu.memory_space<vmem>>, %arg9: memref<1x128xf32, #tpu.memory_space<vmem>>, %arg10: memref<1x128xf32, #tpu.memory_space<vmem>>, %arg11: memref<1x128xf32, #tpu.memory_space<vmem>>) attributes {dimension_semantics = [#tpu.dimension_semantics<parallel>, #tpu.dimension_semantics<arbitrary>, #tpu.dimension_semantics<arbitrary>], iteration_bounds = array<i64: 1, 2, 1>, scalar_prefetch = 0 : i64, scratch_operands = 4 : i64, tpu.core_type = #tpu.core_type<tc>, window_params = [{transform_indices = @transform_0, window_bounds = array<i64: 16, 128>}, {transform_indices = @transform_1, window_bounds = array<i64: 128, 128>}, {transform_indices = @transform_2, window_bounds = array<i64: 1, 128>}, {transform_indices = @transform_3, window_bounds = array<i64: 1, 128>}, {transform_indices = @transform_4, window_bounds = array<i64: 16, 128>}]} {
    %c0 = arith.constant 0 : index
    %c0_0 = arith.constant 0 : index
    %0 = vector.load %arg3[%c0, %c0_0] : memref<16x128xbf16, #tpu.memory_space<vmem>>, vector<16x128xbf16>
    %c0_1 = arith.constant 0 : index
    %c0_2 = arith.constant 0 : index
    %1 = vector.load %arg4[%c0_1, %c0_2] : memref<128x128xbf16, #tpu.memory_space<vmem>>, vector<128x128xbf16>
    %cst = arith.constant dense<0.000000e+00> : vector<16x128xf32>
    %2 = tpu.matmul %0, %1, %cst {dimension_numbers = #tpu.dot_dimension_numbers<[1], [0], [0], [1], [0, 0, 1, 1], [], []>} : vector<16x128xbf16>, vector<128x128xbf16>, vector<16x128xf32> -> vector<16x128xf32>
    %c0_i32 = arith.constant 0 : i32
    %3 = arith.cmpi eq, %arg1, %c0_i32 : i32
    %c0_i32_3 = arith.constant 0 : i32
    %4 = arith.cmpi eq, %arg2, %c0_i32_3 : i32
    %5 = arith.andi %3, %4 : i1
    %6 = arith.extui %5 : i1 to i32
    %c0_i32_4 = arith.constant 0 : i32
    %7 = arith.cmpi ne, %6, %c0_i32_4 : i32
    scf.if %7 {
      %cst_11 = arith.constant 0.000000e+00 : f32
      %19 = vector.broadcast %cst_11 : f32 to vector<1x128xf32>
      %c0_12 = arith.constant 0 : index
      %c0_13 = arith.constant 0 : index
      %20 = vector.load %arg8[%c0_12, %c0_13] : memref<1x128xf32, #tpu.memory_space<vmem>>, vector<1x128xf32>
      tpu.vector_store %arg8[%c0_12, %c0_13], %19 {strides = array<i32>} : memref<1x128xf32, #tpu.memory_space<vmem>>, vector<1x128xf32>,
      %cst_14 = arith.constant 0.000000e+00 : f32
      %21 = vector.broadcast %cst_14 : f32 to vector<1x128xf32>
      %c0_15 = arith.constant 0 : index
      %c0_16 = arith.constant 0 : index
      %22 = vector.load %arg9[%c0_15, %c0_16] : memref<1x128xf32, #tpu.memory_space<vmem>>, vector<1x128xf32>
      tpu.vector_store %arg9[%c0_15, %c0_16], %21 {strides = array<i32>} : memref<1x128xf32, #tpu.memory_space<vmem>>, vector<1x128xf32>,
    } else {
    }
    %c0_i32_5 = arith.constant 0 : i32
    %8 = arith.cmpi eq, %arg1, %c0_i32_5 : i32
    %9 = arith.extui %8 : i1 to i32
    %c0_i32_6 = arith.constant 0 : i32
    %10 = arith.cmpi ne, %9, %c0_i32_6 : i32
    scf.if %10 {
      %c0_11 = arith.constant 0 : index
      %c0_12 = arith.constant 0 : index
      %19 = vector.load %arg8[%c0_11, %c0_12] : memref<1x128xf32, #tpu.memory_space<vmem>>, vector<1x128xf32>
      %cst_13 = arith.constant dense<0.000000e+00> : vector<128xf32>
      %20 = vector.multi_reduction <add>, %2, %cst_13 [0] : vector<16x128xf32> to vector<128xf32>
      %21 = vector.shape_cast %20 : vector<128xf32> to vector<1x128xf32>
      %22 = arith.addf %19, %21 : vector<1x128xf32>
      %c0_14 = arith.constant 0 : index
      %c0_15 = arith.constant 0 : index
      %23 = vector.load %arg8[%c0_14, %c0_15] : memref<1x128xf32, #tpu.memory_space<vmem>>, vector<1x128xf32>
      tpu.vector_store %arg8[%c0_14, %c0_15], %22 {strides = array<i32>} : memref<1x128xf32, #tpu.memory_space<vmem>>, vector<1x128xf32>,
      %c0_16 = arith.constant 0 : index
      %c0_17 = arith.constant 0 : index
      %24 = vector.load %arg9[%c0_16, %c0_17] : memref<1x128xf32, #tpu.memory_space<vmem>>, vector<1x128xf32>
      %25 = arith.mulf %2, %2 : vector<16x128xf32>
      %cst_18 = arith.constant dense<0.000000e+00> : vector<128xf32>
      %26 = vector.multi_reduction <add>, %25, %cst_18 [0] : vector<16x128xf32> to vector<128xf32>
      %27 = vector.shape_cast %26 : vector<128xf32> to vector<1x128xf32>
      %28 = arith.addf %24, %27 : vector<1x128xf32>
      %c0_19 = arith.constant 0 : index
      %c0_20 = arith.constant 0 : index
      %29 = vector.load %arg9[%c0_19, %c0_20] : memref<1x128xf32, #tpu.memory_space<vmem>>, vector<1x128xf32>
      tpu.vector_store %arg9[%c0_19, %c0_20], %28 {strides = array<i32>} : memref<1x128xf32, #tpu.memory_space<vmem>>, vector<1x128xf32>,
    } else {
    }
    %c0_i32_7 = arith.constant 0 : i32
    %11 = arith.cmpi eq, %arg1, %c0_i32_7 : i32
    %c0_i32_8 = arith.constant 0 : i32
    %12 = arith.cmpi eq, %arg2, %c0_i32_8 : i32
    %13 = arith.andi %11, %12 : i1
    %14 = arith.extui %13 : i1 to i32
    %c0_i32_9 = arith.constant 0 : i32
    %15 = arith.cmpi ne, %14, %c0_i32_9 : i32
    scf.if %15 {
      %c0_11 = arith.constant 0 : index
      %c0_12 = arith.constant 0 : index
      %19 = vector.load %arg8[%c0_11, %c0_12] : memref<1x128xf32, #tpu.memory_space<vmem>>, vector<1x128xf32>
      %cst_13 = arith.constant 1.600000e+01 : f32
      %20 = vector.broadcast %cst_13 : f32 to vector<1x128xf32>
      %21 = arith.divf %19, %20 : vector<1x128xf32>
      %c0_14 = arith.constant 0 : index
      %c0_15 = arith.constant 0 : index
      %22 = vector.load %arg9[%c0_14, %c0_15] : memref<1x128xf32, #tpu.memory_space<vmem>>, vector<1x128xf32>
      %cst_16 = arith.constant 1.600000e+01 : f32
      %23 = vector.broadcast %cst_16 : f32 to vector<1x128xf32>
      %24 = arith.divf %22, %23 : vector<1x128xf32>
      %25 = arith.mulf %21, %21 : vector<1x128xf32>
      %26 = arith.subf %24, %25 : vector<1x128xf32>
      %cst_17 = arith.constant 0.000000e+00 : f32
      %27 = vector.broadcast %cst_17 : f32 to vector<1x128xf32>
      %28 = arith.maximumf %26, %27 : vector<1x128xf32>
      %cst_18 = arith.constant 9.99999974E-6 : f32
      %29 = vector.broadcast %cst_18 : f32 to vector<1x128xf32>
      %30 = arith.addf %28, %29 : vector<1x128xf32>
      %31 = math.rsqrt %30 : vector<1x128xf32>
      %c0_19 = arith.constant 0 : index
      %c0_20 = arith.constant 0 : index
      %32 = vector.load %arg5[%c0_19, %c0_20] : memref<1x128xf32, #tpu.memory_space<vmem>>, vector<1x128xf32>
      %33 = arith.mulf %32, %31 : vector<1x128xf32>
      %c0_21 = arith.constant 0 : index
      %c0_22 = arith.constant 0 : index
      %34 = vector.load %arg10[%c0_21, %c0_22] : memref<1x128xf32, #tpu.memory_space<vmem>>, vector<1x128xf32>
      tpu.vector_store %arg10[%c0_21, %c0_22], %33 {strides = array<i32>} : memref<1x128xf32, #tpu.memory_space<vmem>>, vector<1x128xf32>,
      %c0_23 = arith.constant 0 : index
      %c0_24 = arith.constant 0 : index
      %35 = vector.load %arg6[%c0_23, %c0_24] : memref<1x128xf32, #tpu.memory_space<vmem>>, vector<1x128xf32>
      %36 = arith.mulf %21, %33 : vector<1x128xf32>
      %37 = arith.subf %35, %36 : vector<1x128xf32>
      %c0_25 = arith.constant 0 : index
      %c0_26 = arith.constant 0 : index
      %38 = vector.load %arg11[%c0_25, %c0_26] : memref<1x128xf32, #tpu.memory_space<vmem>>, vector<1x128xf32>
      tpu.vector_store %arg11[%c0_25, %c0_26], %37 {strides = array<i32>} : memref<1x128xf32, #tpu.memory_space<vmem>>, vector<1x128xf32>,
    } else {
    }
    %c1_i32 = arith.constant 1 : i32
    %16 = arith.cmpi eq, %arg1, %c1_i32 : i32
    %17 = arith.extui %16 : i1 to i32
    %c0_i32_10 = arith.constant 0 : i32
    %18 = arith.cmpi ne, %17, %c0_i32_10 : i32
    scf.if %18 {
      %c0_11 = arith.constant 0 : index
      %c0_12 = arith.constant 0 : index
      %19 = vector.load %arg10[%c0_11, %c0_12] : memref<1x128xf32, #tpu.memory_space<vmem>>, vector<1x128xf32>
      %20 = vector.broadcast %19 : vector<1x128xf32> to vector<16x128xf32>
      %21 = arith.mulf %2, %20 : vector<16x128xf32>
      %c0_13 = arith.constant 0 : index
      %c0_14 = arith.constant 0 : index
      %22 = vector.load %arg11[%c0_13, %c0_14] : memref<1x128xf32, #tpu.memory_space<vmem>>, vector<1x128xf32>
      %23 = vector.broadcast %22 : vector<1x128xf32> to vector<16x128xf32>
      %24 = arith.addf %21, %23 : vector<16x128xf32>
      %cst_15 = arith.constant 0.000000e+00 : f32
      %25 = vector.broadcast %cst_15 : f32 to vector<16x128xf32>
      %26 = arith.maximumf %24, %25 : vector<16x128xf32>
      %c0_16 = arith.constant 0 : index
      %c0_17 = arith.constant 0 : index
      %27 = vector.load %arg7[%c0_16, %c0_17] : memref<16x128xf32, #tpu.memory_space<vmem>>, vector<16x128xf32>
      tpu.vector_store %arg7[%c0_16, %c0_17], %26 {strides = array<i32>} : memref<16x128xf32, #tpu.memory_space<vmem>>, vector<16x128xf32>,
    } else {
    }
    return
  }
  func.func @transform_0(%arg0: i32, %arg1: i32, %arg2: i32) -> (i32, i32) {
    %c0_i32 = arith.constant 0 : i32
    %c0_i32_0 = arith.constant 0 : i32
    return %arg2, %c0_i32 : i32, i32
  }
  func.func @transform_1(%arg0: i32, %arg1: i32, %arg2: i32) -> (i32, i32) {
    %c0_i32 = arith.constant 0 : i32
    %c0_i32_0 = arith.constant 0 : i32
    return %c0_i32, %arg0 : i32, i32
  }
  func.func @transform_2(%arg0: i32, %arg1: i32, %arg2: i32) -> (i32, i32) {
    %c0_i32 = arith.constant 0 : i32
    %c0_i32_0 = arith.constant 0 : i32
    return %c0_i32, %arg0 : i32, i32
  }
  func.func @transform_3(%arg0: i32, %arg1: i32, %arg2: i32) -> (i32, i32) {
    %c0_i32 = arith.constant 0 : i32
    %c0_i32_0 = arith.constant 0 : i32
    return %c0_i32, %arg0 : i32, i32
  }
  func.func @transform_4(%arg0: i32, %arg1: i32, %arg2: i32) -> (i32, i32) {
    %0 = arith.muli %arg2, %arg1 : i32
    %c0_i32 = arith.constant 0 : i32
    return %0, %arg0 : i32, i32
  }
}

</mosaic_0001>

<bundles_post_ra>
// kernel: _mlp_forward.2
= control target key start
LH: loop header
LB: loop body
LE: loop exit
PB: predicated region body
PF: predicated region fallthrough
CT: control target
= control target key end

     0   :  { %9 = vsyncpa [#allocation7], 0  ;;  %s782_s15 = smov 0   ;;  %s784_s16 = smov 0   ;;  %s846_s0 = inlined_call_operand.vmem [shape: bf16[16,128], index: 0, kind: input, shape index: {}]   ;;  %s847_s1 = inlined_call_operand.hbm [shape: bf16[128,128], index: 1, kind: input, shape index: {}]   ;;  %s848_s2 = inlined_call_operand.vmem [shape: f32[1,128], index: 2, kind: input, shape index: {}]   ;;  %s849_s3 = inlined_call_operand.vmem [shape: f32[1,128], index: 3, kind: input, shape index: {}]   ;;  %s850_s4 = inlined_call_operand.vmem [shape: bf16[16,128], index: 4, kind: output, shape index: {}]  }
   0x1   :  { %s786_s17 = smov 0  }
   0x2 LB: > { %s582_s18 = sadd.s32 4294967295, %s750_s17   ;;  %s30_s19 = sadd.s32 1, %s746_s16  ;;  %s750_s17 = sphi %s786_s17, %s15_s17   ;;  %s746_s16 = sphi %s784_s16, %s852_s16   ;;  %s742_s15 = sphi %s782_s15, %s851_s15  }
   0x3   : > { %p32_p0 = scmp.ge.s32.totalorder %s30_s19, 2  ;;  %p584_p1 = scmp.ge.s32.totalorder %s750_s17, 1 }
   0x4   : > { %p173_p2 = scmp.lt.s32.totalorder %s750_s17, 3  ;;  %p657_p4 = scmp.eq.s32.totalorder %s582_s18, 0 }
   0x5   : > { %s854_s19 = smov (%p32_p0, %s30_s19), 0  ;;  %s195_s22 = sshll.u32 %s847_s1, 4  ;;  %s196_s22 = int_to_ptr.hbm [resolvable:$true] %s195_s22 }
   0x6   : > { %p174_p3 = pnand %p584_p1, %p173_p2  ;;  %s752_s23 = smov [#allocation6]  }
   0x7   : > { %s197_s24 = sshll.u32 %s752_s23, 4  ;;  %s753_s25 = smov 64   ;;  %s198_s24 = int_to_ptr.vmem [resolvable:$true] %s197_s24 }
   0x8   : > { %p653_p5 = pneg %p174_p3  ;;  %s754_s26 = smov 4  }
   0x9   : > { %225 = sbr.rel (%p174_p3) target bundleno = 276 (0x114), region = 36 }
   0xa   : > { %p654_p6 = pnand %p657_p4, %p653_p5 }
   0xc   : > { %656 = dma.hbm_to_vmem [thread:$0]  (!%p654_p6), %s196_s22, 1024, %s198_s24, [#allocation7], %s753_s25, %s753_s25, %s754_s26  }
   0xe   : > { %737 = dma.done.wait (%p657_p4), [#allocation7], 1024  }
   0xf   : > { %739 = vsyncadd (%p657_p4), [#allocation7], 4294966272  ;;  %v642_v0 = vld [vmem:[#allocation6 + $0x38] sm:$0xff]  ;;  %v641_v1 = vld [vmem:[#allocation6 + $0x30] sm:$0xff]  ;;  %p371_p7 = scmp.eq.s32.totalorder %s742_s15, 0 }
  0x10   : > { %357 = vmatpush.bf16.msra.mxu0 %v642_v0  ;;  %v640_v2 = vld [vmem:[#allocation6 + $0x28] sm:$0xff]  ;;  %v639_v3 = vld [vmem:[#allocation6 + $0x20] sm:$0xff]  ;;  %v638_v4 = vld [vmem:[#allocation6 + $0x18] sm:$0xff]  ;;  %v755_v11 = vmov (%p371_p7), 0.0  }
  0x11   : > { %v637_v5 = vld [vmem:[#allocation6 + $0x10] sm:$0xff]  ;;  %v636_v6 = vld [vmem:[#allocation6 + $0x8] sm:$0xff]  ;;  %v635_v7 = vld [vmem:[#allocation6] sm:$0xff]  ;;  %377 = vst [vmem:[#allocation2] sm:$0x1] (%p371_p7), %v755_v11 }
  0x12   : > { %v634_v8 = vld [vmem:[%s846_s0] sm:$0xff]  ;;  %378 = vst [vmem:[#allocation3] sm:$0x1] (%p371_p7), %v755_v11 }
  0x14   : > { %358 = vmatpush.bf16.msra.mxu0 %v641_v1 }
  0x18   : > { %359 = vmatpush.bf16.msra.mxu0 %v640_v2 }
  0x1c   : > { %360 = vmatpush.bf16.msra.mxu0 %v639_v3 }
  0x20   : > { %361 = vmatpush.bf16.msra.mxu0 %v638_v4 }
  0x24   : > { %362 = vmatpush.bf16.msra.mxu0 %v637_v5 }
  0x28   : > { %363 = vmatpush.bf16.msra.mxu0 %v636_v6 }
  0x2c   : > { %364 = vmatpush.bf16.msra.mxu0 %v635_v7 }
  0x2f   : > { %365 = vmatmul.bf16.vlgmr.msra.gmra.mxu0 %v634_v8 }
  0xac   : > { %v810_v9 = vpop.f32.mrf.mxu0 }
  0xb0   : > { %376 = sbr.rel (!%p371_p7) target bundleno = 181 (0xb5), region = 44 }
  0xb4   : > { %v812_v10 = vpop.f32.mrf.mxu0 }
  0xb5 PF: > { %p628_p8 = scmp.ne.s32.totalorder %s742_s15, 0 }
  0xb7   : > { %381 = sbr.rel (%p628_p8) target bundleno = 207 (0xcf), region = 48 }
  0xbc   : > { %v383_v12 = vadd.f32 %v812_v10, %v810_v9  ;;  %v393_v13 = vmul.f32 %v810_v9, %v810_v9  ;;  %v394_v14 = vmul.f32 %v812_v10, %v812_v10  ;;  %v382_v25 = vld [vmem:[#allocation2] sm:$0x1]  ;;  %v392_v28 = vld [vmem:[#allocation3] sm:$0x1] }
  0xbe   : > { %v384_v15 = vrot.slane %v383_v12, 4  ;;  %v395_v16 = vadd.f32 %v394_v14, %v393_v13 }
  0xc0   : > { %v385_v17 = vadd.f32 %v384_v15, %v383_v12  ;;  %v396_v18 = vrot.slane %v395_v16, 4 }
  0xc2   : > { %v386_v19 = vrot.slane %v385_v17, 2  ;;  %v397_v20 = vadd.f32 %v396_v18, %v395_v16 }
  0xc4   : > { %v387_v21 = vadd.f32 %v386_v19, %v385_v17  ;;  %v398_v22 = vrot.slane %v397_v20, 2 }
  0xc6   : > { %v388_v23 = vrot.slane %v387_v21, 1  ;;  %v399_v24 = vadd.f32 %v398_v22, %v397_v20 }
  0xc8   : > { %v389_v26 = vadd.f32 %v388_v23, %v387_v21  ;;  %v400_v27 = vrot.slane %v399_v24, 1 }
  0xca   : > { %v390_v29 = vadd.f32 %v389_v26, %v382_v25  ;;  %v401_v30 = vadd.f32 %v400_v27, %v399_v24 }
  0xcc   : > { %391 = vst [vmem:[#allocation2] sm:$0x1] %v390_v29  ;;  %v402_v31 = vadd.f32 %v401_v30, %v392_v28 }
  0xce   : > { %403 = vst [vmem:[#allocation3] sm:$0x1] %v402_v31 }
  0xcf PF: > { %405 = sbr.rel (!%p371_p7) target bundleno = 259 (0x103), region = 52  ;;  %v756_v32 = vmov (%p371_p7), 16.0   ;;  %v431_v53 = vld [vmem:[%s848_s2] sm:$0x1] (%p371_p7) }
  0xd0   : > { %688 = vrcp.f32 (%p371_p7), %v756_v32  ;;  %v434_v56 = vld [vmem:[%s849_s3] sm:$0x1] (%p371_p7) }
  0xd3   : > { %v406_v37 = vld [vmem:[#allocation2] sm:$0x1] (%p371_p7) }
  0xd5   : > { %v415_v39 = vld [vmem:[#allocation3] sm:$0x1] }
  0xd6   : > { %v689_v33 = vpop.eup %688 }
  0xd7   : > { %v408_v34 = vmul.f32 16.0, %v689_v33  ;;  %vm412_vm0 = vweird.f32 %v689_v33 }
  0xd9   : > { %v409_v35 = vsub.f32 1.0, %v408_v34 }
  0xdb   : > { %v410_v36 = vmul.f32 %v689_v33, %v409_v35 }
  0xdd   : > { %v411_v38 = vadd.f32 %v689_v33, %v410_v36 }
  0xdf   : > { %v413_v40 = vsel %vm412_vm0, %v689_v33, %v411_v38 }
  0xe0   : > { %v414_v41 = vmul.f32 %v413_v40, %v406_v37  ;;  %v416_v42 = vmul.f32 %v415_v39, %v413_v40 }
  0xe2   : > { %v417_v43 = vmul.f32 %v414_v41, %v414_v41 }
  0xe4   : > { %v418_v44 = vsub.f32 %v416_v42, %v417_v43 }
  0xe6   : > { %v419_v45 = vmax.f32 %v418_v44, 0.0 }
  0xe8   : > { %v420_v46 = vadd.f32 1e-05, %v419_v45 }
  0xea   : > { %690 = vrsqrt.f32 %v420_v46  ;;  %vm427_vm1 = vweird.f32 %v420_v46 }
  0xf0   : > { %v691_v47 = vpop.eup %690 }
  0xf1   : > { %v422_v48 = vmul.f32 %v691_v47, %v420_v46  ;;  %vm428_vm2 = vweird.f32 %v691_v47 }
  0xf2   : > { %vm429_vm3 = vmor %vm427_vm1, %vm428_vm2 }
  0xf3   : > { %v423_v49 = vmul.f32 %v691_v47, %v422_v48 }
  0xf5   : > { %v424_v50 = vmul.f32 0.5, %v423_v49 }
  0xf7   : > { %v425_v51 = vsub.f32 1.5, %v424_v50 }
  0xf9   : > { %v426_v52 = vmul.f32 %v691_v47, %v425_v51 }
  0xfb   : > { %v430_v54 = vsel %vm429_vm3, %v691_v47, %v426_v52 }
  0xfc   : > { %v432_v55 = vmul.f32 %v431_v53, %v430_v54 }
  0xfe   : > { %433 = vst [vmem:[#allocation4] sm:$0x1] %v432_v55  ;;  %v435_v57 = vmul.f32 %v432_v55, %v414_v41 }
 0x100   : > { %v436_v58 = vsub.f32 %v434_v56, %v435_v57 }
 0x102   : > { %437 = vst [vmem:[#allocation5] sm:$0x1] %v436_v58 }
 0x103 PF: > { %p629_p9 = scmp.ne.s32.totalorder %s742_s15, 1 }
 0x105   : > { %441 = sbr.rel (%p629_p9) target bundleno = 276 (0x114), region = 56 }
 0x10a   : > { %v692_v59 = vld [vmem:[#allocation4] ss:$0 sm:$0xff]  ;;  %v693_v60 = vld [vmem:[#allocation5] ss:$0 sm:$0xff] }
 0x10b   : > { %v446_v61 = vmul.f32 %v692_v59, %v810_v9  ;;  %v447_v62 = vmul.f32 %v692_v59, %v812_v10 }
 0x10d   : > { %v452_v63 = vadd.f32 %v693_v60, %v446_v61  ;;  %v453_v0 = vadd.f32 %v693_v60, %v447_v62 }
 0x10f   : > { %v454_v1 = vmax.f32 %v452_v63, 0.0  ;;  %v455_v2 = vmax.f32 %v453_v0, 0.0 }
 0x111   : > { %v647_v3 = vpack.c.bf16 %v455_v2, %v454_v1 }
 0x113   : > { %648 = vst [vmem:[%s850_s4] sm:$0xff] %v647_v3  }
 0x114 PF: > { %s15_s17 = sadd.s32 1, %s750_s17   ;;  %s851_s15 = smov %s746_s16 }
 0x115   : > { %p12_p10 = scmp.ge.s32.totalorder %s15_s17, 4   ;;  %s852_s16 = smov %s854_s19 }
 0x117   :  { %14 = sbr.rel (!%p12_p10) target bundleno = 2 (0x2), region = 94 }
 0x11c   :  { %491 = vsyncpa [#allocation7], 1 }
 0x11d   :  { %493 = vsyncpa [#allocation7 + $0x1], 1 }

// kernel: _mlp_forward.3
= control target key start
LH: loop header
LB: loop body
LE: loop exit
PB: predicated region body
PF: predicated region fallthrough
CT: control target
= control target key end

     0   :  { %s718_s15 = smov 0   ;;  %s720_s16 = smov 0   ;;  %s805_s0 = inlined_call_operand.vmem [shape: bf16[16,128], index: 0, kind: input, shape index: {}]   ;;  %s806_s1 = inlined_call_operand.vmem [shape: bf16[128,128], index: 1, kind: input, shape index: {}]   ;;  %s807_s2 = inlined_call_operand.vmem [shape: f32[1,128], index: 2, kind: input, shape index: {}]   ;;  %s808_s3 = inlined_call_operand.vmem [shape: f32[1,128], index: 3, kind: input, shape index: {}]   ;;  %s809_s4 = inlined_call_operand.vmem [shape: f32[16,128], index: 4, kind: output, shape index: {}]  }
   0x1   :  { %s722_s17 = smov 0  }
   0x2 LB: > { %s29_s18 = sadd.s32 1, %s685_s16  ;;  %p581_p0 = scmp.ge.s32.totalorder %s689_s17, 1  ;;  %s689_s17 = sphi %s722_s17, %s14_s17   ;;  %s685_s16 = sphi %s720_s16, %s811_s16   ;;  %s681_s15 = sphi %s718_s15, %s810_s15  }
   0x3   : > { %p31_p1 = scmp.ge.s32.totalorder %s29_s18, 2  ;;  %p211_p2 = scmp.lt.s32.totalorder %s689_s17, 3 }
   0x5   : > { %s813_s18 = smov (%p31_p1, %s29_s18), 0  ;;  %p212_p3 = pnand %p581_p0, %p211_p2 }
   0x6   : > { %p364_p4 = scmp.eq.s32.totalorder (!%p212_p3), %s681_s15, 0 }
   0x7   : > { %215 = sbr.rel (%p212_p3) target bundleno = 272 (0x110), region = 36 }
   0xc   : > { %v633_v0 = vld [vmem:[%s806_s1 + $0x38] sm:$0xff]  ;;  %v632_v1 = vld [vmem:[%s806_s1 + $0x30] sm:$0xff]  ;;  %v631_v2 = vld [vmem:[%s806_s1 + $0x28] sm:$0xff]  ;;  %v691_v11 = vmov (%p364_p4), 0.0  }
   0xd   : > { %350 = vmatpush.bf16.msra.mxu0 %v633_v0  ;;  %v630_v3 = vld [vmem:[%s806_s1 + $0x20] sm:$0xff]  ;;  %v629_v4 = vld [vmem:[%s806_s1 + $0x18] sm:$0xff]  ;;  %v628_v5 = vld [vmem:[%s806_s1 + $0x10] sm:$0xff]  ;;  %370 = vst [vmem:[#allocation2] sm:$0x1] (%p364_p4), %v691_v11 }
   0xe   : > { %v627_v6 = vld [vmem:[%s806_s1 + $0x8] sm:$0xff]  ;;  %v626_v7 = vld [vmem:[%s806_s1] sm:$0xff]  ;;  %371 = vst [vmem:[#allocation3] sm:$0x1] (%p364_p4), %v691_v11 }
   0xf   : > { %v625_v8 = vld [vmem:[%s805_s0] sm:$0xff] }
  0x11   : > { %351 = vmatpush.bf16.msra.mxu0 %v632_v1 }
  0x15   : > { %352 = vmatpush.bf16.msra.mxu0 %v631_v2 }
  0x19   : > { %353 = vmatpush.bf16.msra.mxu0 %v630_v3 }
  0x1d   : > { %354 = vmatpush.bf16.msra.mxu0 %v629_v4 }
  0x21   : > { %355 = vmatpush.bf16.msra.mxu0 %v628_v5 }
  0x25   : > { %356 = vmatpush.bf16.msra.mxu0 %v627_v6 }
  0x29   : > { %357 = vmatpush.bf16.msra.mxu0 %v626_v7 }
  0x2c   : > { %358 = vmatmul.bf16.vlgmr.msra.gmra.mxu0 %v625_v8 }
  0xa9   : > { %v766_v9 = vpop.f32.mrf.mxu0 }
  0xad   : > { %369 = sbr.rel (!%p364_p4) target bundleno = 178 (0xb2), region = 40 }
  0xb1   : > { %v768_v10 = vpop.f32.mrf.mxu0 }
  0xb2 PF: > { %p619_p5 = scmp.ne.s32.totalorder %s681_s15, 0 }
  0xb4   : > { %374 = sbr.rel (%p619_p5) target bundleno = 204 (0xcc), region = 44 }
  0xb9   : > { %v376_v12 = vadd.f32 %v768_v10, %v766_v9  ;;  %v386_v13 = vmul.f32 %v766_v9, %v766_v9  ;;  %v387_v14 = vmul.f32 %v768_v10, %v768_v10  ;;  %v375_v25 = vld [vmem:[#allocation2] sm:$0x1]  ;;  %v385_v28 = vld [vmem:[#allocation3] sm:$0x1] }
  0xbb   : > { %v377_v15 = vrot.slane %v376_v12, 4  ;;  %v388_v16 = vadd.f32 %v387_v14, %v386_v13 }
  0xbd   : > { %v378_v17 = vadd.f32 %v377_v15, %v376_v12  ;;  %v389_v18 = vrot.slane %v388_v16, 4 }
  0xbf   : > { %v379_v19 = vrot.slane %v378_v17, 2  ;;  %v390_v20 = vadd.f32 %v389_v18, %v388_v16 }
  0xc1   : > { %v380_v21 = vadd.f32 %v379_v19, %v378_v17  ;;  %v391_v22 = vrot.slane %v390_v20, 2 }
  0xc3   : > { %v381_v23 = vrot.slane %v380_v21, 1  ;;  %v392_v24 = vadd.f32 %v391_v22, %v390_v20 }
  0xc5   : > { %v382_v26 = vadd.f32 %v381_v23, %v380_v21  ;;  %v393_v27 = vrot.slane %v392_v24, 1 }
  0xc7   : > { %v383_v29 = vadd.f32 %v382_v26, %v375_v25  ;;  %v394_v30 = vadd.f32 %v393_v27, %v392_v24 }
  0xc9   : > { %384 = vst [vmem:[#allocation2] sm:$0x1] %v383_v29  ;;  %v395_v31 = vadd.f32 %v394_v30, %v385_v28 }
  0xcb   : > { %396 = vst [vmem:[#allocation3] sm:$0x1] %v395_v31 }
  0xcc PF: > { %398 = sbr.rel (!%p364_p4) target bundleno = 256 (0x100), region = 48  ;;  %v692_v32 = vmov (%p364_p4), 16.0   ;;  %v424_v53 = vld [vmem:[%s807_s2] sm:$0x1] (%p364_p4) }
  0xcd   : > { %661 = vrcp.f32 (%p364_p4), %v692_v32  ;;  %v427_v56 = vld [vmem:[%s808_s3] sm:$0x1] (%p364_p4) }
  0xd0   : > { %v399_v37 = vld [vmem:[#allocation2] sm:$0x1] (%p364_p4) }
  0xd2   : > { %v408_v39 = vld [vmem:[#allocation3] sm:$0x1] }
  0xd3   : > { %v662_v33 = vpop.eup %661 }
  0xd4   : > { %v401_v34 = vmul.f32 16.0, %v662_v33  ;;  %vm405_vm0 = vweird.f32 %v662_v33 }
  0xd6   : > { %v402_v35 = vsub.f32 1.0, %v401_v34 }
  0xd8   : > { %v403_v36 = vmul.f32 %v662_v33, %v402_v35 }
  0xda   : > { %v404_v38 = vadd.f32 %v662_v33, %v403_v36 }
  0xdc   : > { %v406_v40 = vsel %vm405_vm0, %v662_v33, %v404_v38 }
  0xdd   : > { %v407_v41 = vmul.f32 %v406_v40, %v399_v37  ;;  %v409_v42 = vmul.f32 %v408_v39, %v406_v40 }
  0xdf   : > { %v410_v43 = vmul.f32 %v407_v41, %v407_v41 }
  0xe1   : > { %v411_v44 = vsub.f32 %v409_v42, %v410_v43 }
  0xe3   : > { %v412_v45 = vmax.f32 %v411_v44, 0.0 }
  0xe5   : > { %v413_v46 = vadd.f32 1e-05, %v412_v45 }
  0xe7   : > { %663 = vrsqrt.f32 %v413_v46  ;;  %vm420_vm1 = vweird.f32 %v413_v46 }
  0xed   : > { %v664_v47 = vpop.eup %663 }
  0xee   : > { %v415_v48 = vmul.f32 %v664_v47, %v413_v46  ;;  %vm421_vm2 = vweird.f32 %v664_v47 }
  0xef   : > { %vm422_vm3 = vmor %vm420_vm1, %vm421_vm2 }
  0xf0   : > { %v416_v49 = vmul.f32 %v664_v47, %v415_v48 }
  0xf2   : > { %v417_v50 = vmul.f32 0.5, %v416_v49 }
  0xf4   : > { %v418_v51 = vsub.f32 1.5, %v417_v50 }
  0xf6   : > { %v419_v52 = vmul.f32 %v664_v47, %v418_v51 }
  0xf8   : > { %v423_v54 = vsel %vm422_vm3, %v664_v47, %v419_v52 }
  0xf9   : > { %v425_v55 = vmul.f32 %v424_v53, %v423_v54 }
  0xfb   : > { %426 = vst [vmem:[#allocation4] sm:$0x1] %v425_v55  ;;  %v428_v57 = vmul.f32 %v425_v55, %v407_v41 }
  0xfd   : > { %v429_v58 = vsub.f32 %v427_v56, %v428_v57 }
  0xff   : > { %430 = vst [vmem:[#allocation5] sm:$0x1] %v429_v58 }
 0x100 PF: > { %p620_p6 = scmp.ne.s32.totalorder %s681_s15, 1 }
 0x102   : > { %434 = sbr.rel (%p620_p6) target bundleno = 272 (0x110), region = 52 }
 0x107   : > { %v665_v59 = vld [vmem:[#allocation4] ss:$0 sm:$0xff]  ;;  %v666_v60 = vld [vmem:[#allocation5] ss:$0 sm:$0xff] }
 0x108   : > { %v439_v61 = vmul.f32 %v665_v59, %v766_v9  ;;  %v440_v62 = vmul.f32 %v665_v59, %v768_v10 }
 0x10a   : > { %v445_v63 = vadd.f32 %v666_v60, %v439_v61  ;;  %v446_v0 = vadd.f32 %v666_v60, %v440_v62 }
 0x10c   : > { %v447_v1 = vmax.f32 %v445_v63, 0.0  ;;  %v448_v2 = vmax.f32 %v446_v0, 0.0 }
 0x10e   : > { %449 = vst [vmem:[%s809_s4] sm:$0xff] %v447_v1 }
 0x10f   : > { %450 = vst [vmem:[%s809_s4 + $0x8] sm:$0xff] %v448_v2 }
 0x110 PF: > { %s14_s17 = sadd.s32 1, %s689_s17   ;;  %s810_s15 = smov %s685_s16 }
 0x111   : > { %p11_p7 = scmp.ge.s32.totalorder %s14_s17, 4   ;;  %s811_s16 = smov %s813_s18 }
 0x113   :  { %13 = sbr.rel (!%p11_p7) target bundleno = 2 (0x2), region = 91 }

</bundles_post_ra>
